<compile_context>
chip_gen: v7x
topology: tpu7x:2x2x1
jax: 0.10.0
libtpu: 0.0.40
codegen_flags: <defaults>
</compile_context>

<pallas_src>
import functools

import numpy as np

import jax
import jax.numpy as jnp
from jax.experimental import pallas as pl
from jax.experimental.pallas import tpu as pltpu


def lip_kernel(x_ref, w_ref, gamma_ref, beta_ref, mask_ref, out_ref, *,
               coeff, eps, W, HW, NB):
    # x_ref:     (NB, tc, HW)  channels on sublanes, flattened spatial on lanes
    # w_ref:     (tc, 9)       depthwise 3x3 taps, tap index k = (dy+1)*3+(dx+1)
    # gamma_ref: (tc, 1)       InstanceNorm affine scale
    # beta_ref:  (tc, 1)       InstanceNorm affine shift
    # mask_ref:  (8, HW)       border-validity mask per non-center tap
    # out_ref:   (1, tc, NB)   pooled output (channels on sublanes)
    w9 = w_ref[...].astype(jnp.float32)                      # (tc, 9)
    gamma = gamma_ref[...].astype(jnp.float32)               # (tc, 1)
    beta = beta_ref[...].astype(jnp.float32)                 # (tc, 1)
    ones_r = jnp.ones((HW, 8), jnp.float32)                  # MXU ones-reduce RHS
    inv_hw = 1.0 / float(HW)

    # Non-center taps: (weight column k, lane-roll shift, mask row).
    taps = []
    mrow = 0
    for dy in (-1, 0, 1):
        for dx in (-1, 0, 1):
            if dy == 0 and dx == 0:
                continue
            k = (dy + 1) * 3 + (dx + 1)
            taps.append((k, (-(dy * W + dx)) % HW, mrow))
            mrow += 1

    for n in range(NB):
        x = x_ref[n].astype(jnp.float32)                     # (tc, HW)

        # ---- depthwise 3x3 conv (stride 1, pad 1): 8 lane-rolls + masks ----
        conv = x * w9[:, 4:5]                                # center tap
        for k, shift, mr in taps:
            tap = pltpu.roll(x, shift, 1)                    # XLU lane rotate
            conv = conv + (tap * mask_ref[mr:mr + 1, :]) * w9[:, k:k + 1]

        # ---- InstanceNorm2d stats (one-pass), spatial sums on the MXU ----
        s1 = jnp.dot(conv, ones_r, preferred_element_type=jnp.float32)[:, 0:1]
        s2 = jnp.dot(conv * conv, ones_r,
                     preferred_element_type=jnp.float32)[:, 0:1]
        mean = s1 * inv_hw
        var = jnp.maximum(s2 * inv_hw - mean * mean, 0.0)
        scale = gamma * jax.lax.rsqrt(var + eps)             # (tc, 1)
        bias = beta - mean * scale                           # (tc, 1)
        y = conv * scale + bias

        # ---- softmax(sigmoid(y)*coeff) over space fused with pooling ----
        # logits lie in [0, coeff] so the constant coeff is a valid softmax
        # shift (cheaper than a per-channel spatial max).
        e = jnp.exp(coeff * jax.nn.sigmoid(y) - coeff)       # (tc, HW)
        denom = jnp.dot(e, ones_r, preferred_element_type=jnp.float32)[:, 0:1]
        num = jnp.dot(x * e, ones_r,
                      preferred_element_type=jnp.float32)[:, 0:1]
        out_ref[0, :, n:n + 1] = (num / denom).astype(out_ref.dtype)


def _border_masks(H, W):
    """(8, H*W) f32: row per non-center tap, 1 iff the tap is in-bounds."""
    p = np.arange(H * W)
    r, c = p // W, p % W
    rows = []
    for dy in (-1, 0, 1):
        for dx in (-1, 0, 1):
            if dy == 0 and dx == 0:
                continue
            ok = (r + dy >= 0) & (r + dy < H) & (c + dx >= 0) & (c + dx < W)
            rows.append(ok)
    return np.stack(rows, axis=0).astype(np.float32)


def _vmem_config():
    """(vmem_limit_bytes, per-step soft budget) -- generation aware."""
    try:
        info = pltpu.get_tpu_info()
        cap = int(getattr(info, "vmem_capacity_bytes", 64 * 1024 * 1024))
    except Exception:
        cap = 64 * 1024 * 1024                       # conservative fallback
    limit = min(int(cap * 0.75), 96 * 1024 * 1024)   # ~48 MiB v7x, ~96 MiB v5e/v6e
    budget = int(limit * 0.85)                       # headroom for compiler scratch
    return limit, budget


def _pick_tiling(B, C, HW, vmem_budget):
    """Returns (C_pad, channel_tile, batch_tile)."""
    itemsize = 4

    def need(tc, nb):
        slab = tc * HW * itemsize
        # double-buffered x block + ~6 live f32 (tc, HW) intermediates + params
        return (2 * nb + 6) * slab + 4 * tc * 128 * itemsize \
            + 8 * HW * itemsize + (1 << 16)

    C_pad8 = ((C + 7) // 8) * 8
    cands = {(C, C)}                                  # untiled: no channel padding
    for t in range(8, min(C_pad8, 512) + 1, 8):
        if C_pad8 % t == 0:
            cands.add((C_pad8, t))

    feasible = []
    for cp, tc in cands:
        for nb in (8, 4, 2, 1):
            if B % nb == 0 and need(tc, nb) <= vmem_budget:
                feasible.append((cp, tc, nb))
    if not feasible:
        cp, tc = min(cands, key=lambda x: x[1])
        feasible = [(cp, tc, 1)]

    def score(cfg):
        cp, tc, nb = cfg
        steps = (B // nb) * (cp // tc)
        # prefer >=2 grid steps (v7x has 2 TensorCores), then minimal channel
        # padding, then bigger channel tiles, then bigger batch tiles.
        return (steps >= 2, -cp, tc, nb)

    return max(feasible, key=score)


def lip_forward(x, conv_w, gamma, beta, *, coeff, eps=1e-5):
    """x: (B, C, H, W), conv_w: (C, 3, 3), gamma/beta: (C,). Returns (B, C, 1, 1)."""
    B, C, H, W = x.shape
    HW = H * W
    vmem_limit, vmem_budget = _vmem_config()
    C_pad, tc, nb = _pick_tiling(B, C, HW, vmem_budget)

    # NCHW-native: contiguous reshape only -- no HBM relayout pass.
    x_flat = x.reshape(B, C, HW)
    w9 = conv_w.reshape(C, 9).astype(jnp.float32)
    g = gamma.reshape(C, 1).astype(jnp.float32)
    bt = beta.reshape(C, 1).astype(jnp.float32)
    if C_pad != C:
        pc = C_pad - C
        x_flat = jnp.pad(x_flat, ((0, 0), (0, pc), (0, 0)))
        w9 = jnp.pad(w9, ((0, pc), (0, 0)))
        g = jnp.pad(g, ((0, pc), (0, 0)), constant_values=1.0)
        bt = jnp.pad(bt, ((0, pc), (0, 0)))
    masks = jnp.asarray(_border_masks(H, W))          # (8, HW)

    n_bt = B // nb
    n_ct = C_pad // tc
    grid = (n_bt, n_ct)

    kernel = functools.partial(lip_kernel, coeff=float(coeff), eps=float(eps),
                               W=W, HW=HW, NB=nb)
    out3 = pl.pallas_call(
        kernel,
        out_shape=jax.ShapeDtypeStruct((n_bt, C_pad, nb), jnp.float32),
        grid_spec=pltpu.PrefetchScalarGridSpec(
            num_scalar_prefetch=0,
            grid=grid,
            in_specs=[
                pl.BlockSpec((nb, tc, HW), lambda b, ct: (b, ct, 0)),
                pl.BlockSpec((tc, 9), lambda b, ct: (ct, 0)),
                pl.BlockSpec((tc, 1), lambda b, ct: (ct, 0)),
                pl.BlockSpec((tc, 1), lambda b, ct: (ct, 0)),
                pl.BlockSpec((8, HW), lambda b, ct: (0, 0)),
            ],
            out_specs=pl.BlockSpec((1, tc, nb), lambda b, ct: (b, ct, 0)),
        ),
        compiler_params=pltpu.CompilerParams(
            dimension_semantics=("parallel", "parallel"),
            vmem_limit_bytes=vmem_limit,
        ),
    )(x_flat, w9, g, bt, masks)

    # (n_bt, C_pad, nb) -> (B, C): tiny relayout on a B*C_pad-element array.
    out = jnp.transpose(out3, (0, 2, 1)).reshape(B, C_pad)[:, :C]
    return out.reshape(B, C, 1, 1)


def lip_reference(x, conv_w, gamma, beta, *, coeff, eps=1e-5):
    """Pure-JAX reference mirroring the PyTorch module."""
    B, C, H, W = x.shape
    w4 = conv_w.reshape(C, 1, 3, 3)
    conv = jax.lax.conv_general_dilated(
        x, w4, window_strides=(1, 1), padding=((1, 1), (1, 1)),
        dimension_numbers=("NCHW", "OIHW", "NCHW"), feature_group_count=C)
    mean = conv.mean(axis=(2, 3), keepdims=True)
    var = ((conv - mean) ** 2).mean(axis=(2, 3), keepdims=True)  # biased, like InstanceNorm
    y = gamma.reshape(1, C, 1, 1) * (conv - mean) / jnp.sqrt(var + eps) \
        + beta.reshape(1, C, 1, 1)
    logits = jax.nn.sigmoid(y) * coeff
    w = jax.nn.softmax(logits.reshape(B, C, -1), axis=2)
    return (x.reshape(B, C, -1) * w).sum(axis=2).reshape(B, C, 1, 1)


if __name__ == "__main__":
    B, C, H, W = 2, 4, 16, 16
    COEFF = 12.0

    key = jax.random.PRNGKey(0)
    kx, kw, kg, kb = jax.random.split(key, 4)

    x = jax.random.normal(kx, (B, C, H, W), dtype=jnp.float32)
    # The PyTorch __init__ zero-fills the depthwise conv weights and
    # InstanceNorm defaults to gamma=1, beta=0; use non-trivial values here so
    # the whole compute path is exercised.
    conv_w = 0.1 * jax.random.normal(kw, (C, 3, 3), dtype=jnp.float32)
    gamma = 1.0 + 0.1 * jax.random.normal(kg, (C,), dtype=jnp.float32)
    beta = 0.1 * jax.random.normal(kb, (C,), dtype=jnp.float32)

    out = lip_forward(x, conv_w, gamma, beta, coeff=COEFF)
    out = jax.block_until_ready(out)

    ref = lip_reference(x, conv_w, gamma, beta, coeff=COEFF)
    assert out.shape == (B, C, 1, 1), out.shape
    assert jnp.allclose(out, ref, atol=1e-4, rtol=1e-4), (out, ref)

    print("KERNEL_OK")
</pallas_src>

<mosaic_0001>
module attributes {stable_mosaic.version = 11 : i64} {
  func.func @lip_kernel(%arg0: i32, %arg1: i32, %arg2: memref<1x4x256xf32, #tpu.memory_space<vmem>>, %arg3: memref<4x9xf32, #tpu.memory_space<vmem>>, %arg4: memref<4x1xf32, #tpu.memory_space<vmem>>, %arg5: memref<4x1xf32, #tpu.memory_space<vmem>>, %arg6: memref<8x256xf32, #tpu.memory_space<vmem>>, %arg7: memref<1x4x1xf32, #tpu.memory_space<vmem>>) attributes {dimension_semantics = [#tpu.dimension_semantics<parallel>, #tpu.dimension_semantics<parallel>], iteration_bounds = array<i64: 2, 1>, scalar_prefetch = 0 : i64, scratch_operands = 0 : i64, tpu.core_type = #tpu.core_type<tc>, window_params = [{transform_indices = @transform_0, window_bounds = array<i64: 1, 4, 256>}, {transform_indices = @transform_1, window_bounds = array<i64: 4, 9>}, {transform_indices = @transform_2, window_bounds = array<i64: 4, 1>}, {transform_indices = @transform_3, window_bounds = array<i64: 4, 1>}, {pipeline_mode = #tpu.pipeline_mode<synchronous>, transform_indices = @transform_4, window_bounds = array<i64: 8, 256>}, {transform_indices = @transform_5, window_bounds = array<i64: 1, 4, 1>}]} {
    %c0 = arith.constant 0 : index
    %c0_0 = arith.constant 0 : index
    %0 = vector.load %arg3[%c0, %c0_0] : memref<4x9xf32, #tpu.memory_space<vmem>>, vector<4x9xf32>
    %c0_1 = arith.constant 0 : index
    %c0_2 = arith.constant 0 : index
    %1 = vector.load %arg4[%c0_1, %c0_2] : memref<4x1xf32, #tpu.memory_space<vmem>>, vector<4x1xf32>
    %c0_3 = arith.constant 0 : index
    %c0_4 = arith.constant 0 : index
    %2 = vector.load %arg5[%c0_3, %c0_4] : memref<4x1xf32, #tpu.memory_space<vmem>>, vector<4x1xf32>
    %cst = arith.constant 1.000000e+00 : f32
    %3 = vector.broadcast %cst : f32 to vector<256x8xf32>
    %c0_5 = arith.constant 0 : index
    %c0_6 = arith.constant 0 : index
    %c0_7 = arith.constant 0 : index
    %4 = vector.load %arg2[%c0_5, %c0_6, %c0_7] : memref<1x4x256xf32, #tpu.memory_space<vmem>>, vector<1x4x256xf32>
    %5 = vector.shape_cast %4 : vector<1x4x256xf32> to vector<4x256xf32>
    %6 = vector.extract_strided_slice %0 {offsets = [0, 4], sizes = [4, 1], strides = [1, 1]} : vector<4x9xf32> to vector<4x1xf32>
    %7 = vector.broadcast %6 : vector<4x1xf32> to vector<4x256xf32>
    %8 = arith.mulf %5, %7 : vector<4x256xf32>
    %c17_i32 = arith.constant 17 : i32
    %9 = tpu.dynamic_rotate %5 by %c17_i32 dim 1 : vector<4x256xf32>, i32 -> vector<4x256xf32>
    %c0_8 = arith.constant 0 : index
    %c0_9 = arith.constant 0 : index
    %10 = vector.load %arg6[%c0_8, %c0_9] : memref<8x256xf32, #tpu.memory_space<vmem>>, vector<1x256xf32>
    %11 = vector.broadcast %10 : vector<1x256xf32> to vector<4x256xf32>
    %12 = arith.mulf %9, %11 : vector<4x256xf32>
    %13 = vector.extract_strided_slice %0 {offsets = [0, 0], sizes = [4, 1], strides = [1, 1]} : vector<4x9xf32> to vector<4x1xf32>
    %14 = vector.broadcast %13 : vector<4x1xf32> to vector<4x256xf32>
    %15 = arith.mulf %12, %14 : vector<4x256xf32>
    %16 = arith.addf %8, %15 : vector<4x256xf32>
    %c16_i32 = arith.constant 16 : i32
    %17 = tpu.dynamic_rotate %5 by %c16_i32 dim 1 : vector<4x256xf32>, i32 -> vector<4x256xf32>
    %c1 = arith.constant 1 : index
    %c0_10 = arith.constant 0 : index
    %18 = vector.load %arg6[%c1, %c0_10] : memref<8x256xf32, #tpu.memory_space<vmem>>, vector<1x256xf32>
    %19 = vector.broadcast %18 : vector<1x256xf32> to vector<4x256xf32>
    %20 = arith.mulf %17, %19 : vector<4x256xf32>
    %21 = vector.extract_strided_slice %0 {offsets = [0, 1], sizes = [4, 1], strides = [1, 1]} : vector<4x9xf32> to vector<4x1xf32>
    %22 = vector.broadcast %21 : vector<4x1xf32> to vector<4x256xf32>
    %23 = arith.mulf %20, %22 : vector<4x256xf32>
    %24 = arith.addf %16, %23 : vector<4x256xf32>
    %c15_i32 = arith.constant 15 : i32
    %25 = tpu.dynamic_rotate %5 by %c15_i32 dim 1 : vector<4x256xf32>, i32 -> vector<4x256xf32>
    %c2 = arith.constant 2 : index
    %c0_11 = arith.constant 0 : index
    %26 = vector.load %arg6[%c2, %c0_11] : memref<8x256xf32, #tpu.memory_space<vmem>>, vector<1x256xf32>
    %27 = vector.broadcast %26 : vector<1x256xf32> to vector<4x256xf32>
    %28 = arith.mulf %25, %27 : vector<4x256xf32>
    %29 = vector.extract_strided_slice %0 {offsets = [0, 2], sizes = [4, 1], strides = [1, 1]} : vector<4x9xf32> to vector<4x1xf32>
    %30 = vector.broadcast %29 : vector<4x1xf32> to vector<4x256xf32>
    %31 = arith.mulf %28, %30 : vector<4x256xf32>
    %32 = arith.addf %24, %31 : vector<4x256xf32>
    %c1_i32 = arith.constant 1 : i32
    %33 = tpu.dynamic_rotate %5 by %c1_i32 dim 1 : vector<4x256xf32>, i32 -> vector<4x256xf32>
    %c3 = arith.constant 3 : index
    %c0_12 = arith.constant 0 : index
    %34 = vector.load %arg6[%c3, %c0_12] : memref<8x256xf32, #tpu.memory_space<vmem>>, vector<1x256xf32>
    %35 = vector.broadcast %34 : vector<1x256xf32> to vector<4x256xf32>
    %36 = arith.mulf %33, %35 : vector<4x256xf32>
    %37 = vector.extract_strided_slice %0 {offsets = [0, 3], sizes = [4, 1], strides = [1, 1]} : vector<4x9xf32> to vector<4x1xf32>
    %38 = vector.broadcast %37 : vector<4x1xf32> to vector<4x256xf32>
    %39 = arith.mulf %36, %38 : vector<4x256xf32>
    %40 = arith.addf %32, %39 : vector<4x256xf32>
    %c255_i32 = arith.constant 255 : i32
    %41 = tpu.dynamic_rotate %5 by %c255_i32 dim 1 : vector<4x256xf32>, i32 -> vector<4x256xf32>
    %c4 = arith.constant 4 : index
    %c0_13 = arith.constant 0 : index
    %42 = vector.load %arg6[%c4, %c0_13] : memref<8x256xf32, #tpu.memory_space<vmem>>, vector<1x256xf32>
    %43 = vector.broadcast %42 : vector<1x256xf32> to vector<4x256xf32>
    %44 = arith.mulf %41, %43 : vector<4x256xf32>
    %45 = vector.extract_strided_slice %0 {offsets = [0, 5], sizes = [4, 1], strides = [1, 1]} : vector<4x9xf32> to vector<4x1xf32>
    %46 = vector.broadcast %45 : vector<4x1xf32> to vector<4x256xf32>
    %47 = arith.mulf %44, %46 : vector<4x256xf32>
    %48 = arith.addf %40, %47 : vector<4x256xf32>
    %c241_i32 = arith.constant 241 : i32
    %49 = tpu.dynamic_rotate %5 by %c241_i32 dim 1 : vector<4x256xf32>, i32 -> vector<4x256xf32>
    %c5 = arith.constant 5 : index
    %c0_14 = arith.constant 0 : index
    %50 = vector.load %arg6[%c5, %c0_14] : memref<8x256xf32, #tpu.memory_space<vmem>>, vector<1x256xf32>
    %51 = vector.broadcast %50 : vector<1x256xf32> to vector<4x256xf32>
    %52 = arith.mulf %49, %51 : vector<4x256xf32>
    %53 = vector.extract_strided_slice %0 {offsets = [0, 6], sizes = [4, 1], strides = [1, 1]} : vector<4x9xf32> to vector<4x1xf32>
    %54 = vector.broadcast %53 : vector<4x1xf32> to vector<4x256xf32>
    %55 = arith.mulf %52, %54 : vector<4x256xf32>
    %56 = arith.addf %48, %55 : vector<4x256xf32>
    %c240_i32 = arith.constant 240 : i32
    %57 = tpu.dynamic_rotate %5 by %c240_i32 dim 1 : vector<4x256xf32>, i32 -> vector<4x256xf32>
    %c6 = arith.constant 6 : index
    %c0_15 = arith.constant 0 : index
    %58 = vector.load %arg6[%c6, %c0_15] : memref<8x256xf32, #tpu.memory_space<vmem>>, vector<1x256xf32>
    %59 = vector.broadcast %58 : vector<1x256xf32> to vector<4x256xf32>
    %60 = arith.mulf %57, %59 : vector<4x256xf32>
    %61 = vector.extract_strided_slice %0 {offsets = [0, 7], sizes = [4, 1], strides = [1, 1]} : vector<4x9xf32> to vector<4x1xf32>
    %62 = vector.broadcast %61 : vector<4x1xf32> to vector<4x256xf32>
    %63 = arith.mulf %60, %62 : vector<4x256xf32>
    %64 = arith.addf %56, %63 : vector<4x256xf32>
    %c239_i32 = arith.constant 239 : i32
    %65 = tpu.dynamic_rotate %5 by %c239_i32 dim 1 : vector<4x256xf32>, i32 -> vector<4x256xf32>
    %c7 = arith.constant 7 : index
    %c0_16 = arith.constant 0 : index
    %66 = vector.load %arg6[%c7, %c0_16] : memref<8x256xf32, #tpu.memory_space<vmem>>, vector<1x256xf32>
    %67 = vector.broadcast %66 : vector<1x256xf32> to vector<4x256xf32>
    %68 = arith.mulf %65, %67 : vector<4x256xf32>
    %69 = vector.extract_strided_slice %0 {offsets = [0, 8], sizes = [4, 1], strides = [1, 1]} : vector<4x9xf32> to vector<4x1xf32>
    %70 = vector.broadcast %69 : vector<4x1xf32> to vector<4x256xf32>
    %71 = arith.mulf %68, %70 : vector<4x256xf32>
    %72 = arith.addf %64, %71 : vector<4x256xf32>
    %cst_17 = arith.constant dense<0.000000e+00> : vector<4x8xf32>
    %73 = tpu.matmul %72, %3, %cst_17 {dimension_numbers = #tpu.dot_dimension_numbers<[1], [0], [0], [1], [0, 0, 1, 1], [], []>} : vector<4x256xf32>, vector<256x8xf32>, vector<4x8xf32> -> vector<4x8xf32>
    %74 = vector.extract_strided_slice %73 {offsets = [0, 0], sizes = [4, 1], strides = [1, 1]} : vector<4x8xf32> to vector<4x1xf32>
    %75 = arith.mulf %72, %72 : vector<4x256xf32>
    %cst_18 = arith.constant dense<0.000000e+00> : vector<4x8xf32>
    %76 = tpu.matmul %75, %3, %cst_18 {dimension_numbers = #tpu.dot_dimension_numbers<[1], [0], [0], [1], [0, 0, 1, 1], [], []>} : vector<4x256xf32>, vector<256x8xf32>, vector<4x8xf32> -> vector<4x8xf32>
    %77 = vector.extract_strided_slice %76 {offsets = [0, 0], sizes = [4, 1], strides = [1, 1]} : vector<4x8xf32> to vector<4x1xf32>
    %cst_19 = arith.constant 3.906250e-03 : f32
    %78 = vector.broadcast %cst_19 : f32 to vector<4x1xf32>
    %79 = arith.mulf %74, %78 : vector<4x1xf32>
    %cst_20 = arith.constant 3.906250e-03 : f32
    %80 = vector.broadcast %cst_20 : f32 to vector<4x1xf32>
    %81 = arith.mulf %77, %80 : vector<4x1xf32>
    %82 = arith.mulf %79, %79 : vector<4x1xf32>
    %83 = arith.subf %81, %82 : vector<4x1xf32>
    %cst_21 = arith.constant 0.000000e+00 : f32
    %84 = vector.broadcast %cst_21 : f32 to vector<4x1xf32>
    %85 = arith.maximumf %83, %84 : vector<4x1xf32>
    %cst_22 = arith.constant 9.99999974E-6 : f32
    %86 = vector.broadcast %cst_22 : f32 to vector<4x1xf32>
    %87 = arith.addf %85, %86 : vector<4x1xf32>
    %88 = math.rsqrt %87 : vector<4x1xf32>
    %89 = arith.mulf %1, %88 : vector<4x1xf32>
    %90 = arith.mulf %79, %89 : vector<4x1xf32>
    %91 = arith.subf %2, %90 : vector<4x1xf32>
    %92 = vector.broadcast %89 : vector<4x1xf32> to vector<4x256xf32>
    %93 = arith.mulf %72, %92 : vector<4x256xf32>
    %94 = vector.broadcast %91 : vector<4x1xf32> to vector<4x256xf32>
    %95 = arith.addf %93, %94 : vector<4x256xf32>
    %96 = arith.negf %95 : vector<4x256xf32>
    %97 = math.exp %96 : vector<4x256xf32>
    %cst_23 = arith.constant 1.000000e+00 : f32
    %98 = vector.broadcast %cst_23 : f32 to vector<4x256xf32>
    %99 = arith.addf %98, %97 : vector<4x256xf32>
    %100 = arith.divf %98, %99 : vector<4x256xf32>
    %cst_24 = arith.constant 1.200000e+01 : f32
    %101 = vector.broadcast %cst_24 : f32 to vector<4x256xf32>
    %102 = arith.mulf %101, %100 : vector<4x256xf32>
    %cst_25 = arith.constant 1.200000e+01 : f32
    %103 = vector.broadcast %cst_25 : f32 to vector<4x256xf32>
    %104 = arith.subf %102, %103 : vector<4x256xf32>
    %105 = math.exp %104 : vector<4x256xf32>
    %cst_26 = arith.constant dense<0.000000e+00> : vector<4x8xf32>
    %106 = tpu.matmul %105, %3, %cst_26 {dimension_numbers = #tpu.dot_dimension_numbers<[1], [0], [0], [1], [0, 0, 1, 1], [], []>} : vector<4x256xf32>, vector<256x8xf32>, vector<4x8xf32> -> vector<4x8xf32>
    %107 = vector.extract_strided_slice %106 {offsets = [0, 0], sizes = [4, 1], strides = [1, 1]} : vector<4x8xf32> to vector<4x1xf32>
    %108 = arith.mulf %5, %105 : vector<4x256xf32>
    %cst_27 = arith.constant dense<0.000000e+00> : vector<4x8xf32>
    %109 = tpu.matmul %108, %3, %cst_27 {dimension_numbers = #tpu.dot_dimension_numbers<[1], [0], [0], [1], [0, 0, 1, 1], [], []>} : vector<4x256xf32>, vector<256x8xf32>, vector<4x8xf32> -> vector<4x8xf32>
    %110 = vector.extract_strided_slice %109 {offsets = [0, 0], sizes = [4, 1], strides = [1, 1]} : vector<4x8xf32> to vector<4x1xf32>
    %111 = arith.divf %110, %107 : vector<4x1xf32>
    %c0_28 = arith.constant 0 : index
    %c0_29 = arith.constant 0 : index
    %c0_30 = arith.constant 0 : index
    %112 = vector.load %arg7[%c0_28, %c0_29, %c0_30] : memref<1x4x1xf32, #tpu.memory_space<vmem>>, vector<1x4x1xf32>
    %113 = vector.shape_cast %112 : vector<1x4x1xf32> to vector<4x1xf32>
    %114 = vector.shape_cast %111 : vector<4x1xf32> to vector<1x4x1xf32>
    tpu.vector_store %arg7[%c0_28, %c0_29, %c0_30], %114 {strides = array<i32>} : memref<1x4x1xf32, #tpu.memory_space<vmem>>, vector<1x4x1xf32>,
    return
  }
  func.func @transform_0(%arg0: i32, %arg1: i32) -> (i32, i32, i32) {
    %c0_i32 = arith.constant 0 : i32
    %c0_i32_0 = arith.constant 0 : i32
    return %arg0, %arg1, %c0_i32 : i32, i32, i32
  }
  func.func @transform_1(%arg0: i32, %arg1: i32) -> (i32, i32) {
    %c0_i32 = arith.constant 0 : i32
    %c0_i32_0 = arith.constant 0 : i32
    return %arg1, %c0_i32 : i32, i32
  }
  func.func @transform_2(%arg0: i32, %arg1: i32) -> (i32, i32) {
    %c0_i32 = arith.constant 0 : i32
    %c0_i32_0 = arith.constant 0 : i32
    return %arg1, %c0_i32 : i32, i32
  }
  func.func @transform_3(%arg0: i32, %arg1: i32) -> (i32, i32) {
    %c0_i32 = arith.constant 0 : i32
    %c0_i32_0 = arith.constant 0 : i32
    return %arg1, %c0_i32 : i32, i32
  }
  func.func @transform_4(%arg0: i32, %arg1: i32) -> (i32, i32) {
    %c0_i32 = arith.constant 0 : i32
    %c0_i32_0 = arith.constant 0 : i32
    %c0_i32_1 = arith.constant 0 : i32
    return %c0_i32, %c0_i32_0 : i32, i32
  }
  func.func @transform_5(%arg0: i32, %arg1: i32) -> (i32, i32, i32) {
    %c0_i32 = arith.constant 0 : i32
    %c0_i32_0 = arith.constant 0 : i32
    return %arg0, %arg1, %c0_i32 : i32, i32, i32
  }
}

</mosaic_0001>

<bundles_post_ra>
// kernel: tpu_custom_call.1
= control target key start
LH: loop header
LB: loop body
LE: loop exit
PB: predicated region body
PF: predicated region fallthrough
CT: control target
= control target key end

     0   :  { %10 = vsyncpa [#allocation3], 0  ;;  %s1847_s0 = inlined_call_operand.hbm [shape: f32[2,4,256], index: 0, kind: input, shape index: {}]   ;;  %s1848_s1 = inlined_call_operand.vmem [shape: f32[4,9], index: 1, kind: input, shape index: {}]   ;;  %s1849_s2 = inlined_call_operand.vmem [shape: f32[4,1], index: 2, kind: input, shape index: {}]   ;;  %s1850_s3 = inlined_call_operand.vmem [shape: f32[4,1], index: 3, kind: input, shape index: {}]   ;;  %s1851_s4 = inlined_call_operand.vmem [shape: f32[8,256], index: 4, kind: input, shape index: {}]   ;;  %s1852_s5 = inlined_call_operand.vmem [shape: f32[2,4,1], index: 5, kind: output, shape index: {}]  }
   0x1   :  { %12 = vsyncpa [#allocation3 + $0x1], 0  ;;  %s1533_s18 = smov 0   ;;  %s1535_s19 = smov 0  }
   0x2   :  { %s1537_s20 = smov 0   ;;  %s1539_s21 = smov 0  }
   0x3   :  { %s1541_s22 = smov 0   ;;  %s1543_s23 = smov 0  }
   0x4 LB: > { %s1076_s24 = sadd.s32 4294967295, %s1481_s23   ;;  %s30_s25 = sadd.s32 1, %s1477_s22  ;;  %s1481_s23 = sphi %s1543_s23, %s18_s23   ;;  %s1477_s22 = sphi %s1541_s22, %s1862_s22   ;;  %s1473_s21 = sphi %s1539_s21, %s1861_s21   ;;  %s1469_s20 = sphi %s1537_s20, %s1860_s20   ;;  %s1465_s19 = sphi %s1535_s19, %s1859_s19   ;;  %s1461_s18 = sphi %s1533_s18, %s1858_s18  }
   0x5   : > { %p32_p0 = scmp.ge.s32.totalorder %s30_s25, 2  ;;  %s39_s26 = sadd.s32 1, %s1469_s20 }
   0x6   : > { %p46_p1 = scmp.ne.s32.totalorder %s1469_s20, %s1465_s19  ;;  %p47_p2 = scmp.eq.s32.totalorder %s1481_s23, 0 }
   0x7   : > { %s1864_s25 = smov (%p32_p0, %s30_s25), 0  ;;  %p52_p4 = scmp.ne.s32.totalorder %s1465_s19, %s1461_s18 }
   0x8   : > { %p1569_p3 = por %p47_p2, %p46_p1  ;;  %s34_s28 = ssub.s32 %s1477_s22, %s1864_s25 }
   0x9   : > { %p53_p5 = scmp.eq.s32.totalorder %s1076_s24, 0  ;;  %p37_p6 = scmp.eq.s32.totalorder %s34_s28, 0 }
   0xa   : > { %p1311_p8 = scmp.lt.s32.totalorder %s1481_s23, 2  ;;  %s227_s6 = sand.u32 1, %s1469_s20  }
   0xb   : > { %p1576_p7 = por %p53_p5, %p52_p4  ;;  %s1100_s7 = sshll.u32 %s1477_s22, 7 }
   0xc   : > { %s1582_s30 = scalar_select %p37_p6, %s1469_s20, %s39_s26  }
   0xd   : > { %s1083_s8 = sshll.u32 %s227_s6, 3  ;;  %s1589_s11 = scalar_lea.hbm %s1847_s0, %s1100_s7 }
   0xe   : > { %s231_s12 = scalar_lea.vmem [#allocation2], %s1083_s8  ;;  %p1593_p9 = pnand %p1311_p8, %p1569_p3 }
   0xf   : > { %s241_s13 = sshll.u32 %s231_s12, 4  ;;  %s228_s15 = scalar_lea.sflag [#allocation3], %s227_s6  ;;  %s1597_s13 = int_to_ptr.vmem [resolvable:$true] %s241_s13 }
  0x10   : > { %s1401_s16 = scalar_lea.hbm %s1589_s11, 128  ;;  %p1403_p13 = pneg %p1593_p9 }
  0x11   : > { %p1402_p12 = scmp.ne.s32.totalorder %s1589_s11, %s1401_s16  ;;  %s1406_s24 = scalar_lea.hbm %s1847_s0, 256 }
  0x12   : > { %p1407_p2 = scmp.lt.u32.totalorder %s1589_s11, %s1847_s0  ;;  %p1408_p3 = scmp.lt.u32.totalorder %s1406_s24, %s1401_s16 }
  0x13   : > { %p1404_p0 = pnand %p1403_p13, %p1402_p12  ;;  %p1410_p5 = scmp.lt.u32.totalorder %s1401_s16, %s1589_s11 }
  0x14   : > { %p1409_p4 = por %p1408_p3, %p1407_p2 }
  0x15   : > { %p1405_p1 = pneg %p1404_p0 }
  0x16   : > { %p1411_p6 = por %p1410_p5, %p1409_p4 }
  0x18   : > { %p1412_p8 = pnand %p1411_p6, %p1405_p1 }
  0x1a   : > { %1415 = shalt.err (!%p1412_p8)
}
  0x1b   : > { %s1416_s28 = scalar_lea.vmem %s1597_s13, 128  ;;  %s1483_s6 = smov [#allocation2]  }
  0x1c   : > { %p1417_p12 = scmp.ne.s32.totalorder %s1597_s13, %s1416_s28  ;;  %s1421_s7 = sshll.u32 %s1483_s6, 4  ;;  %s1422_s7 = int_to_ptr.vmem [resolvable:$false] %s1421_s7 }
  0x1d   : > { %s1423_s8 = scalar_lea.vmem %s1422_s7, 256  ;;  %p1424_p11 = scmp.lt.s32.totalorder %s1597_s13, %s1422_s7 }
  0x1e   : > { %p1419_p0 = pnand %p1417_p12, %p1403_p13  ;;  %p1425_p2 = scmp.lt.s32.totalorder %s1423_s8, %s1416_s28 }
  0x20   : > { %p1420_p10 = pneg %p1419_p0  ;;  %p1426_p3 = por %p1425_p2, %p1424_p11 }
  0x22   : > { %p1427_p4 = pnand %p1426_p3, %p1420_p10 }
  0x24   : > { %1430 = shalt.err (!%p1427_p4)
}
  0x25   : > { %1310 = dma.hbm_to_vmem [thread:$0]  (!%p1593_p9), %s1589_s11, 128, %s1597_s13, %s228_s15  }
  0x26   : > { %p1856_p1 = scmp.lt.s32.totalorder %s1481_s23, 3  ;;  %p1857_p5 = scmp.ge.s32.totalorder %s1481_s23, 1 }
  0x28   : > { %p247_p13 = pnand %p1857_p5, %p1856_p1 }
  0x29   : > { %s252_s9 = sand.u32 (!%p247_p13), 1, %s1465_s19  }
  0x2a   : > { %250 = sbr.rel (%p247_p13) target bundleno = 901 (0x385), region = 40  ;;  %s1087_s10 = sshll.u32 (!%p247_p13), %s252_s9, 3 }
  0x2b   : > { %s253_s12 = scalar_lea.sflag (!%p247_p13), [#allocation3], %s252_s9  ;;  %s256_s16 = scalar_lea.vmem (!%p247_p13), [#allocation2], %s1087_s10 }
  0x31   : > { %1456 = dma.done.wait (%p1576_p7), %s253_s12, 128  }
  0x32   : > { %1458 = vsyncadd (%p1576_p7), %s253_s12, 4294967168  ;;  %v1484_v0 = vmov 1   ;;  %v1485_v1 = vmov 4   ;;  %v316_v2 = vld [vmem:[%s1848_s1] sm:$0xf]  ;;  %v1486_v4 = vmov 0   ;;  %v327_v22 = vlaneseq }
  0x33   : > { %1381 = vset.pattern.permute.xlu1 %v1484_v0  ;;  %1379 = vset.pattern.permute.xlu0 %v1485_v1  ;;  %v1638_v3 = vld [vmem:[%s256_s16] sm:$0xff]  ;;  %s1487_s14 = smov 17   ;;  %v1488_v6 = vmov 2   ;;  %s1489_s29 = smov 16   ;;  %v1490_v7 = vmov 3   ;;  %v1491_v8 = vmov 5  }
  0x34   : > { %393 = vperm.xlu1 %1381, %v316_v2   ;;  %322 = vperm.xlu0 %1379, %v316_v2   ;;  %v1643_v5 = vcombine.high %v1638_v3, %v1638_v3  ;;  %s1492_s15 = smov 15   ;;  %v1493_v9 = vmov 6   ;;  %s1494_s17 = smov 1   ;;  %v1495_v10 = vmov 7   ;;  %v1496_v11 = vmov 8  }
  0x35   : > { %s1497_s18 = smov 127   ;;  %s1498_s24 = smov 111   ;;  %v1499_v12 = vmov 1.0|1.0   ;;  %v328_v25 = vshrl.u32 %v327_v22, 7  ;;  %v1704_v27 = vand.u32 127, %v327_v22 }
  0x36   : > { %1241 = vmatprep.subr.bf16.mxu0 %v1499_v12  ;;  %1257 = vmatprep.subr.bf16.mxu1 %v1499_v12  ;;  %s1500_s26 = smov 113   ;;  %s1501_s27 = smov 112   ;;  %v1502_v28 = vmov 839922192   ;;  %vm943_vm8 = vcmask 3072  }
  0x37   : > { %1242 = vmatpush3.bf16.msra.mxu0 %v1499_v12  ;;  %1258 = vmatpush3.bf16.msra.mxu1 %v1499_v12  ;;  %v325_v29 = vunpack.c.l.s4 %v1502_v28  ;;  %v1706_v31 = vsub.s32 0, %v328_v25  ;;  %v1708_v32 = vsub.s32 1, %v328_v25  ;;  %v345_v33 = vld [vmem:[%s1851_s4] ss:$8 sm:$0x3]  ;;  %vm342_vm0 = vcmp.lt.s32.totalorder %v1704_v27, 17 }
  0x38   : > { %1380 = vset.pattern.permute.xlu0 %v1486_v4  ;;  %336 = vrot.lane.b32.xlu1 %v1638_v3, %s1487_s14  ;;  %v1089_v36 = vld [vmem:[%s1851_s4 + $0x1] ss:$8 sm:$0x3]  ;;  %vm374_vm1 = vcmp.lt.s32.totalorder %v1704_v27, 16  ;;  %vm407_vm2 = vcmp.lt.s32.totalorder %v1704_v27, 15  ;;  %vm440_vm3 = vcmp.lt.s32.totalorder %v1704_v27, 1 }
  0x39   : > { %360 = vperm.xlu0 %1380, %v316_v2   ;;  %1389 = vset.pattern.permute.xlu1 %v1486_v4  ;;  %v326_v35 = vunpack.c.0.s8 %v325_v29  ;;  %v350_v38 = vrot.slane %v345_v33, %v1706_v31  ;;  %v354_v39 = vrot.slane %v345_v33, %v1708_v32  ;;  %v383_v42 = vrot.slane %v1089_v36, %v1706_v31  ;;  %v1090_v44 = vld [vmem:[%s1851_s4 + $0x2] ss:$8 sm:$0x3]  ;;  %v1091_v45 = vld [vmem:[%s1851_s4 + $0x3] ss:$8 sm:$0x3] }
  0x3a   : > { %1243 = vmatprep.subr.bf16.mxu0 %v1499_v12  ;;  %1259 = vmatprep.subr.bf16.mxu1 %v1499_v12  ;;  %v387_v43 = vrot.slane %v1089_v36, %v1708_v32  ;;  %v1092_v53 = vld [vmem:[%s1851_s4 + $0x4] ss:$8 sm:$0x3]  ;;  %v416_v54 = vrot.slane %v1090_v44, %v1706_v31  ;;  %v420_v55 = vrot.slane %v1090_v44, %v1708_v32  ;;  %vm473_vm4 = vcmp.lt.s32.totalorder %v1704_v27, 127  ;;  %p309_p7 = scmp.lt.s32.totalorder %s1473_s21, 1 }
  0x3b   : > { %1244 = vmatpush3.bf16.msra.mxu0 %v1499_v12  ;;  %1260 = vmatpush3.bf16.msra.mxu1 %v1499_v12  ;;  %v1730_v46 = vsub.s32 %v326_v35, %v328_v25  ;;  %v449_v56 = vrot.slane %v1091_v45, %v1706_v31  ;;  %v453_v62 = vrot.slane %v1091_v45, %v1708_v32  ;;  %vm506_vm5 = vcmp.lt.s32.totalorder %v1704_v27, 113  ;;  %v1094_v35 = vld [vmem:[%s1851_s4 + $0x6] ss:$8 sm:$0x3] }
  0x3c   : > { %338 = vrot.lane.b32.xlu1 %v1643_v5, %s1487_s14  ;;  %1245 = vmatprep.subr.bf16.mxu0 %v1499_v12  ;;  %v482_v63 = vrot.slane %v1092_v53, %v1706_v31  ;;  %vm539_vm6 = vcmp.lt.s32.totalorder %v1704_v27, 112  ;;  %vm572_vm7 = vcmp.lt.s32.totalorder %v1704_v27, 111  ;;  %s1866_s21 = smov (!%p309_p7, %s1473_s21), 1 }
  0x3d   : > { %1382 = vset.pattern.permute.xlu0 %v1488_v6  ;;  %1261 = vmatprep.subr.bf16.mxu1 %v1499_v12  ;;  %v1093_v6 = vld [vmem:[%s1851_s4 + $0x5] ss:$8 sm:$0x3]  ;;  %s1088_s7 = sshll.u32 %s1866_s21, 2 }
  0x3e   : > { %426 = vperm.xlu0 %1382, %v316_v2   ;;  %s315_s10 = scalar_lea.vmem %s1852_s5, %s1088_s7 }
  0x3f   : > { %1246 = vmatpush3.bf16.msra.mxu0 %v1499_v12  ;;  %1262 = vmatpush3.bf16.msra.mxu1 %v1499_v12 }
  0x40   : > { %370 = vrot.lane.b32.xlu1 %v1638_v3, %s1489_s29  ;;  %1247 = vmatprep.subr.bf16.mxu0 %v1499_v12 }
  0x41   : > { %1263 = vmatprep.subr.bf16.mxu1 %v1499_v12 }
  0x42   : > { %1383 = vset.pattern.permute.xlu0 %v1490_v7 }
  0x43   : > { %459 = vperm.xlu0 %1383, %v316_v2   ;;  %1248 = vmatpush3.bf16.msra.mxu0 %v1499_v12 }
  0x44   : > { %372 = vrot.lane.b32.xlu1 %v1643_v5, %s1489_s29  ;;  %1264 = vmatpush3.bf16.msra.mxu1 %v1499_v12 }
  0x45   : > { %1249 = vmatprep.subr.bf16.mxu0 %v1499_v12  ;;  %1265 = vmatprep.subr.bf16.mxu1 %v1499_v12 }
  0x47   : > { %1384 = vset.pattern.permute.xlu0 %v1491_v8  ;;  %1250 = vmatpush3.bf16.msra.mxu0 %v1499_v12 }
  0x48   : > { %403 = vrot.lane.b32.xlu1 %v1638_v3, %s1492_s15  ;;  %492 = vperm.xlu0 %1384, %v316_v2  }
  0x49   : > { %1266 = vmatpush3.bf16.msra.mxu1 %v1499_v12  ;;  %1251 = vmatprep.subr.bf16.mxu0 %v1499_v12 }
  0x4a   : > { %1267 = vmatprep.subr.bf16.mxu1 %v1499_v12 }
  0x4b   : > { %1252 = vmatpush3.bf16.msra.mxu0 %v1499_v12 }
  0x4c   : > { %405 = vrot.lane.b32.xlu1 %v1643_v5, %s1492_s15  ;;  %1385 = vset.pattern.permute.xlu0 %v1493_v9  ;;  %v486_v9 = vrot.slane %v1092_v53, %v1708_v32 }
  0x4d   : > { %525 = vperm.xlu0 %1385, %v316_v2   ;;  %1268 = vmatpush3.bf16.msra.mxu1 %v1499_v12 }
  0x4e   : > { %1253 = vmatprep.subr.bf16.mxu0 %v1499_v12  ;;  %1269 = vmatprep.subr.bf16.mxu1 %v1499_v12 }
  0x4f   : > { %1254 = vmatpush3.bf16.msra.mxu0 %v1499_v12 }
  0x50   : > { %436 = vrot.lane.b32.xlu1 %v1638_v3, %s1494_s17  ;;  %1255 = vmatprep.subr.bf16.mxu0 %v1499_v12 }
  0x51   : > { %1386 = vset.pattern.permute.xlu0 %v1495_v10  ;;  %1270 = vmatpush3.bf16.msra.mxu1 %v1499_v12 }
  0x52   : > { %558 = vperm.xlu0 %1386, %v316_v2   ;;  %1271 = vmatprep.subr.bf16.mxu1 %v1499_v12 }
  0x53   : > { %1256 = vmatpush3.bf16.msra.mxu0 %v1499_v12 }
  0x54   : > { %438 = vrot.lane.b32.xlu1 %v1643_v5, %s1494_s17  ;;  %1273 = vmatprep.subr.bf16.mxu0 %v1499_v12 }
  0x55   : > { %1272 = vmatpush3.bf16.msra.mxu1 %v1499_v12 }
  0x56   : > { %1387 = vset.pattern.permute.xlu0 %v1496_v11  ;;  %1289 = vmatprep.subr.bf16.mxu1 %v1499_v12 }
  0x57   : > { %591 = vperm.xlu0 %1387, %v316_v2  }
  0x58   : > { %469 = vrot.lane.b32.xlu1 %v1638_v3, %s1497_s18 }
  0x5b   : > { %568 = vrot.lane.b32.xlu0 %v1638_v3, %s1498_s24 }
  0x5c   : > { %471 = vrot.lane.b32.xlu1 %v1643_v5, %s1497_s18  ;;  %1388 = vset.pattern.permute.xlu0 %v1486_v4 }
  0x60   : > { %502 = vrot.lane.b32.xlu1 %v1638_v3, %s1500_s26 }
  0x64   : > { %504 = vrot.lane.b32.xlu1 %v1643_v5, %s1500_s26 }
  0x68   : > { %535 = vrot.lane.b32.xlu1 %v1638_v3, %s1501_s27 }
  0x6c   : > { %537 = vrot.lane.b32.xlu1 %v1643_v5, %s1501_s27 }
  0x70   : > { %570 = vrot.lane.b32.xlu1 %v1643_v5, %s1498_s24 }
  0xb3   : > { %v1696_v13 = vpop.permute.xlu1 %393  ;;  %v1698_v17 = vpop.permute.xlu0 %322 }
  0xb4   : > { %v330_v61 = vrot.slane %v1698_v17, %v1730_v46 }
  0xb6   : > { %v332_v22 = vmul.f32 %v330_v61, %v1638_v3 }
  0xb7   : > { %v337_v14 = vpop.permute.xlu1 %336 }
  0xb8   : > { %v361_v20 = vpop.permute.xlu0 %360 }
  0xbb   : > { %v339_v15 = vpop.permute.xlu1 %338 }
  0xbc   : > { %v343_v40 = vsel %vm342_vm0, %v337_v14, %v339_v15  ;;  %v344_v41 = vsel %vm342_vm0, %v339_v15, %v337_v14 }
  0xbd   : > { %v1700_v23 = vpop.permute.xlu0 %426  ;;  %v357_v51 = vmul.f32 %v350_v38, %v344_v41  ;;  %v358_v52 = vmul.f32 %v354_v39, %v343_v40 }
  0xbf   : > { %v371_v16 = vpop.permute.xlu1 %370  ;;  %v363_v1 = vmul.f32 %v361_v20, %v357_v51  ;;  %v364_v2 = vmul.f32 %v361_v20, %v358_v52  ;;  %v519_v20 = vrot.slane %v1093_v6, %v1708_v32 }
  0xc2   : > { %v1702_v26 = vpop.permute.xlu0 %459 }
  0xc3   : > { %v373_v18 = vpop.permute.xlu1 %372 }
  0xc4   : > { %v375_v47 = vsel %vm374_vm1, %v371_v16, %v373_v18  ;;  %v376_v48 = vsel %vm374_vm1, %v373_v18, %v371_v16 }
  0xc5   : > { %v390_v57 = vmul.f32 %v383_v42, %v376_v48  ;;  %v391_v58 = vmul.f32 %v387_v43, %v375_v47  ;;  %v548_v43 = vrot.slane %v1094_v35, %v1706_v31 }
  0xc7   : > { %v404_v19 = vpop.permute.xlu1 %403  ;;  %v1713_v34 = vpop.permute.xlu0 %492  ;;  %v396_v11 = vmul.f32 %v1696_v13, %v390_v57  ;;  %v397_v14 = vmul.f32 %v1696_v13, %v391_v58 }
  0xc9   : > { %v400_v36 = vcombine.low %v396_v11, %v397_v14 }
  0xcb   : > { %v406_v21 = vpop.permute.xlu1 %405 }
  0xcc   : > { %v1733_v50 = vpop.permute.xlu0 %525  ;;  %v408_v59 = vsel %vm407_vm2, %v404_v19, %v406_v21  ;;  %v409_v60 = vsel %vm407_vm2, %v406_v21, %v404_v19  ;;  %v515_v19 = vrot.slane %v1093_v6, %v1706_v31 }
  0xcd   : > { %v423_v7 = vmul.f32 %v416_v54, %v409_v60  ;;  %v424_v8 = vmul.f32 %v420_v55, %v408_v59 }
  0xcf   : > { %v437_v24 = vpop.permute.xlu1 %436  ;;  %v429_v13 = vmul.f32 %v1700_v23, %v423_v7  ;;  %v430_v29 = vmul.f32 %v1700_v23, %v424_v8  ;;  %v552_v23 = vrot.slane %v1094_v35, %v1708_v32  ;;  %v317_v35 = vld [vmem:[%s1849_s2] sm:$0xf] }
  0xd1   : > { %v559_v10 = vpop.permute.xlu0 %558  ;;  %v433_v45 = vcombine.low %v429_v13, %v430_v29 }
  0xd3   : > { %v439_v30 = vpop.permute.xlu1 %438 }
  0xd4   : > { %v441_v4 = vsel %vm440_vm3, %v437_v24, %v439_v30  ;;  %v442_v5 = vsel %vm440_vm3, %v439_v30, %v437_v24  ;;  %v367_v24 = vcombine.low %v363_v1, %v364_v2 }
  0xd5   : > { %v456_v17 = vmul.f32 %v449_v56, %v442_v5  ;;  %v457_v18 = vmul.f32 %v453_v62, %v441_v4 }
  0xd6   : > { %v592_v42 = vpop.permute.xlu0 %591  ;;  %v369_v44 = vadd.f32 %v367_v24, %v332_v22 }
  0xd7   : > { %v470_v37 = vpop.permute.xlu1 %469  ;;  %v463_v38 = vmul.f32 %v1702_v26, %v457_v18 }
  0xda   : > { %v569_v62 = vpop.permute.xlu0 %568 }
  0xdb   : > { %v472_v49 = vpop.permute.xlu1 %471 }
  0xdc   : > { %v474_v15 = vsel %vm473_vm4, %v470_v37, %v472_v49  ;;  %v475_v16 = vsel %vm473_vm4, %v472_v49, %v470_v37  ;;  %v462_v37 = vmul.f32 %v1702_v26, %v456_v17  ;;  %v1095_v26 = vld [vmem:[%s1851_s4 + $0x7] ss:$8 sm:$0x3]  ;;  %v402_v49 = vadd.f32 %v400_v36, %v369_v44 }
  0xdd   : > { %v489_v30 = vmul.f32 %v482_v63, %v474_v15  ;;  %v490_v33 = vmul.f32 %v486_v9, %v475_v16  ;;  %v581_v57 = vrot.slane %v1095_v26, %v1706_v31  ;;  %v585_v58 = vrot.slane %v1095_v26, %v1708_v32 }
  0xde   : > { %v466_v51 = vcombine.low %v462_v37, %v463_v38 }
  0xdf   : > { %v503_v0 = vpop.permute.xlu1 %502  ;;  %v495_v47 = vmul.f32 %v1713_v34, %v489_v30  ;;  %v496_v48 = vmul.f32 %v1713_v34, %v490_v33  ;;  %v435_v34 = vadd.f32 %v433_v45, %v402_v49 }
  0xe1   : > { %v499_v59 = vcombine.low %v495_v47, %v496_v48  ;;  %v468_v63 = vadd.f32 %v466_v51, %v435_v34 }
  0xe3   : > { %v505_v21 = vpop.permute.xlu1 %504  ;;  %v501_v6 = vadd.f32 %v499_v59, %v468_v63 }
  0xe4   : > { %v507_v25 = vsel %vm506_vm5, %v503_v0, %v505_v21  ;;  %v508_v28 = vsel %vm506_vm5, %v505_v21, %v503_v0 }
  0xe5   : > { %v522_v39 = vmul.f32 %v515_v19, %v507_v25  ;;  %v523_v40 = vmul.f32 %v519_v20, %v508_v28 }
  0xe7   : > { %v536_v41 = vpop.permute.xlu1 %535  ;;  %v528_v52 = vmul.f32 %v1733_v50, %v522_v39  ;;  %v529_v53 = vmul.f32 %v1733_v50, %v523_v40 }
  0xe9   : > { %v532_v0 = vcombine.low %v528_v52, %v529_v53 }
  0xeb   : > { %v538_v54 = vpop.permute.xlu1 %537  ;;  %v534_v8 = vadd.f32 %v532_v0, %v501_v6 }
  0xec   : > { %v540_v55 = vsel %vm539_vm6, %v536_v41, %v538_v54  ;;  %v541_v56 = vsel %vm539_vm6, %v538_v54, %v536_v41 }
  0xed   : > { %v555_v60 = vmul.f32 %v548_v43, %v540_v55  ;;  %v556_v61 = vmul.f32 %v552_v23, %v541_v56 }
  0xef   : > { %v561_v1 = vmul.f32 %v559_v10, %v555_v60  ;;  %v562_v2 = vmul.f32 %v559_v10, %v556_v61  ;;  %v571_v4 = vpop.permute.xlu1 %570 }
  0xf0   : > { %v573_v50 = vsel %vm572_vm7, %v569_v62, %v571_v4  ;;  %v574_v5 = vsel %vm572_vm7, %v571_v4, %v569_v62 }
  0xf1   : > { %v565_v31 = vcombine.low %v561_v1, %v562_v2  ;;  %v588_v7 = vmul.f32 %v581_v57, %v573_v50  ;;  %v589_v32 = vmul.f32 %v585_v58, %v574_v5 }
  0xf3   : > { %v594_v9 = vmul.f32 %v592_v42, %v588_v7  ;;  %v595_v11 = vmul.f32 %v592_v42, %v589_v32  ;;  %v567_v14 = vadd.f32 %v565_v31, %v534_v8 }
  0xf5   : > { %v598_v15 = vcombine.low %v594_v9, %v595_v11 }
  0xf7   : > { %v600_v16 = vadd.f32 %v598_v15, %v567_v14 }
  0xf9   : > { %v602_v17 = vcombine.high %v600_v16, %v600_v16  ;;  %v674_v18 = vmul.f32 %v600_v16, %v600_v16 }
  0xfb   : > { %668 = vmatprep.mubr.f32.mxu0 %v602_v17  ;;  %v676_v10 = vcombine.high %v674_v18, %v674_v18 }
  0xfc   : > { %669 = vmatmul.mubr.f32.vlgmr.msra.gmra.mrb[0].mxu0 %v600_v16 }
  0xfd   : > { %742 = vmatprep.mubr.f32.mxu1 %v676_v10  ;;  %1274 = vmatpush3.bf16.msra.mxu0 %v1499_v12 }
  0xfe   : > { %743 = vmatmul.mubr.f32.vlgmr.msra.gmra.mrb[0].mxu1 %v674_v18  ;;  %1275 = vmatprep.subr.bf16.mxu0 %v1499_v12 }
  0xff   : > { %1290 = vmatpush3.bf16.msra.mxu1 %v1499_v12 }
 0x100   : > { %1291 = vmatprep.subr.bf16.mxu1 %v1499_v12 }
 0x101   : > { %1276 = vmatpush3.bf16.msra.mxu0 %v1499_v12 }
 0x102   : > { %1277 = vmatprep.subr.bf16.mxu0 %v1499_v12 }
 0x103   : > { %1292 = vmatpush3.bf16.msra.mxu1 %v1499_v12 }
 0x104   : > { %1293 = vmatprep.subr.bf16.mxu1 %v1499_v12 }
 0x105   : > { %1278 = vmatpush3.bf16.msra.mxu0 %v1499_v12 }
 0x106   : > { %1279 = vmatprep.subr.bf16.mxu0 %v1499_v12 }
 0x107   : > { %1294 = vmatpush3.bf16.msra.mxu1 %v1499_v12 }
 0x108   : > { %1295 = vmatprep.subr.bf16.mxu1 %v1499_v12 }
 0x109   : > { %1280 = vmatpush3.bf16.msra.mxu0 %v1499_v12 }
 0x10a   : > { %1281 = vmatprep.subr.bf16.mxu0 %v1499_v12 }
 0x10b   : > { %1296 = vmatpush3.bf16.msra.mxu1 %v1499_v12 }
 0x10c   : > { %1297 = vmatprep.subr.bf16.mxu1 %v1499_v12 }
 0x10d   : > { %1282 = vmatpush3.bf16.msra.mxu0 %v1499_v12 }
 0x10e   : > { %1283 = vmatprep.subr.bf16.mxu0 %v1499_v12 }
 0x10f   : > { %1298 = vmatpush3.bf16.msra.mxu1 %v1499_v12 }
 0x110   : > { %1299 = vmatprep.subr.bf16.mxu1 %v1499_v12 }
 0x111   : > { %1284 = vmatpush3.bf16.msra.mxu0 %v1499_v12 }
 0x112   : > { %1285 = vmatprep.subr.bf16.mxu0 %v1499_v12 }
 0x113   : > { %1300 = vmatpush3.bf16.msra.mxu1 %v1499_v12 }
 0x114   : > { %1301 = vmatprep.subr.bf16.mxu1 %v1499_v12 }
 0x115   : > { %1286 = vmatpush3.bf16.msra.mxu0 %v1499_v12 }
 0x116   : > { %1287 = vmatprep.subr.bf16.mxu0 %v1499_v12 }
 0x117   : > { %1302 = vmatpush3.bf16.msra.mxu1 %v1499_v12 }
 0x118   : > { %1303 = vmatprep.subr.bf16.mxu1 %v1499_v12 }
 0x119   : > { %1288 = vmatpush3.bf16.msra.mxu0 %v1499_v12 }
 0x11b   : > { %1304 = vmatpush3.bf16.msra.mxu1 %v1499_v12  ;;  %v318_v12 = vld [vmem:[%s1850_s3] sm:$0xf] }
 0x1cf   : > { %v1133_v27 = vpop.f32.mrb[0].mxu0 }
 0x1d0   : > { %v1134_v19 = vpop.f32.mrb[1].mxu0 }
 0x1d1   : > { %v1135_v20 = vadd.f32 %v1134_v19, %v1133_v27  ;;  %v1168_v21 = vpop.f32.mrb[0].mxu1 }
 0x1d2   : > { %v1169_v22 = vpop.f32.mrb[1].mxu1 }
 0x1d3   : > { %v748_v24 = vmul.f32 0.00390625, %v1135_v20  ;;  %v1170_v25 = vadd.f32 %v1169_v22, %v1168_v21 }
 0x1d5   : > { %v750_v28 = vmul.f32 %v748_v24, %v748_v24  ;;  %v749_v13 = vmul.f32 0.00390625, %v1170_v25 }
 0x1d7   : > { %v751_v29 = vsub.f32 %v749_v13, %v750_v28 }
 0x1d9   : > { %v752_v30 = vmax.f32 %v751_v29, 0.0 }
 0x1db   : > { %v753_v33 = vadd.f32 1e-05, %v752_v30 }
 0x1dd   : > { %1391 = vrsqrt.f32 %v753_v33 }
 0x1e7   : > { %v1392_v36 = vpop.eup %1391 }
 0x1e8   : > { %v755_v37 = vmul.f32 %v1392_v36, %v317_v35 }
 0x1ea   : > { %760 = vperm.xlu0 %1388, %v755_v37   ;;  %v756_v38 = vmul.f32 %v755_v37, %v748_v24 }
 0x1ec   : > { %v757_v39 = vsub.f32 %v318_v12, %v756_v38 }
 0x1ee   : > { %773 = vperm.xlu1 %1389, %v757_v39  }
 0x269   : > { %v761_v40 = vpop.permute.xlu0 %760 }
 0x26a   : > { %v768_v41 = vrot.slane %v761_v40, %v1730_v46 }
 0x26c   : > { %v770_v43 = vmul.f32 %v768_v41, %v600_v16 }
 0x26d   : > { %v774_v42 = vpop.permute.xlu1 %773 }
 0x26e   : > { %v781_v23 = vrot.slane %v774_v42, %v1730_v46 }
 0x270   : > { %v783_v44 = vadd.f32 %v781_v23, %v770_v43 }
 0x272   : > { %v1096_v45 = vmul.f32 -1.442695, %v783_v44 }
 0x274   : > { %1393 = vpow2.f32 %v1096_v45 }
 0x27e   : > { %v1394_v47 = vpop.eup %1393 }
 0x27f   : > { %v787_v48 = vadd.f32 1.0, %v1394_v47 }
 0x281   : > { %1395 = vrcp.f32 %v787_v48 }
 0x28b   : > { %v1396_v26 = vpop.eup %1395 }
 0x28c   : > { %v790_v49 = vmul.f32 12.0, %v1396_v26 }
 0x28e   : > { %v1097_v51 = vadd.f32 -12.0, %v790_v49 }
 0x290   : > { %v792_v52 = vmul.f32 1.442695, %v1097_v51 }
 0x292   : > { %1397 = vpow2.f32 %v792_v52 }
 0x29c   : > { %v1398_v53 = vpop.eup %1397 }
 0x29d   : > { %v795_v54 = vcombine.high %v1398_v53, %v1398_v53  ;;  %v867_v55 = vmul.f32 %v1398_v53, %v1638_v3 }
 0x29f   : > { %861 = vmatprep.mubr.f32.mxu0 %v795_v54  ;;  %v869_v56 = vcombine.high %v867_v55, %v867_v55 }
 0x2a0   : > { %862 = vmatmul.mubr.f32.vlgmr.msra.gmra.mrb[2].mxu0 %v1398_v53 }
 0x2a1   : > { %935 = vmatprep.mubr.f32.mxu1 %v869_v56 }
 0x2a2   : > { %936 = vmatmul.mubr.f32.vlgmr.msra.gmra.mrb[2].mxu1 %v867_v55 }
 0x373   : > { %v1203_v46 = vpop.f32.mrb[2].mxu0 }
 0x374   : > { %v1204_v57 = vpop.f32.mrb[3].mxu0 }
 0x375   : > { %v1205_v58 = vadd.f32 %v1204_v57, %v1203_v46  ;;  %v1238_v34 = vpop.f32.mrb[2].mxu1 }
 0x376   : > { %v1239_v59 = vpop.f32.mrb[3].mxu1 }
 0x377   : > { %1399 = vrcp.f32 %v1205_v58  ;;  %v1240_v60 = vadd.f32 %v1239_v59, %v1238_v34 }
 0x381   : > { %v1400_v61 = vpop.eup %1399 }
 0x382   : > { %v942_v3 = vmul.f32 %v1400_v61, %v1240_v60 }
 0x384   : > { %944 = vst.msk [vmem:[%s315_s10] sm:$0xf] %vm943_vm8, %v942_v3 }
 0x385 PF: > { %s18_s23 = sadd.s32 1, %s1481_s23   ;;  %s1858_s18 = smov %s1465_s19 }
 0x386   : > { %p15_p9 = scmp.ge.s32.totalorder %s18_s23, 4   ;;  %s1859_s19 = smov %s1469_s20 }
 0x387   : > { %s1860_s20 = smov %s1582_s30  ;;  %s1861_s21 = smov %s1477_s22 }
 0x388   : > { %s1862_s22 = smov %s1864_s25  ;;  %17 = sbr.rel (!%p15_p9) target bundleno = 4 (0x4), region = 96 }
 0x38f   :  { %970 = vsyncpa [#allocation3], 1 }
 0x390   :  { %972 = vsyncpa [#allocation3 + $0x1], 1 }

</bundles_post_ra>
